<compile_context>
chip_gen: v5e
topology: v5e:2x2
jax: 0.10.0
libtpu: 0.0.40
codegen_flags: <defaults>
</compile_context>

<pallas_src>
import functools

import jax
import jax.numpy as jnp
from jax.experimental import pallas as pl
from jax.experimental.pallas import tpu as pltpu

_LANE = 128      # lanes per vreg
_SUBLANE = 8     # sublanes per vreg (f32)
_TB = _LANE      # samples per grid step (one full lane group -> unmasked vst)


def _round_up(x, m):
  return ((x + m - 1) // m) * m


def _static_int_pow(x, n):
  """x ** n for a static Python int n, using only VPU multiplies."""
  if n < 0:
    return 1.0 / _static_int_pow(x, -n)
  result = None
  base = x
  while n > 0:
    if n & 1:
      result = base if result is None else result * base
    n >>= 1
    if n:
      base = base * base
  return jnp.ones_like(x) if result is None else result


def _lagmps_kernel(s_ref, c_ref, slab_ref, o_ref, *,
                   D, d_pad, num_models, mean_b2,
                   coef0, coef1, pen0, pen1_int, pen1_float, use_mxu):
  """One batch tile of 128 samples, batch on the lane axis.

  s_ref:    (Dp, TB)   zero-padded MPS parameter vectors (batch on lanes)
  c_ref:    (2,  TB)   Lagrange multipliers (batch on lanes)
  slab_ref: (Hs, Cp)   frozen lane-packed ensemble (constant index_map -> resident)
                       cols [0,Dp)=W1^T, col Dp = b1, col Dp+1 = W2
  o_ref:    (1,  TB)   lane-dense output tile
  """
  s = s_ref[...]                                   # (Dp, TB)
  w1t = slab_ref[:, :d_pad]                        # (Hs, Dp)
  b1 = slab_ref[:, d_pad:d_pad + 1]                # (Hs, 1)
  w2 = slab_ref[:, d_pad + 1:d_pad + 2]            # (Hs, 1)

  # ---- layer 1 of every model for every sample in the tile -----------------
  if use_mxu:
    # Wide case (large D): one MXU matmul beats D broadcast-FMA passes.
    z = jnp.dot(w1t, s, preferred_element_type=jnp.float32) + b1    # (Hs, TB)
  else:
    # Small case: stay on the VPU (exact f32, no MXU fill/drain latency).
    z = b1 + w1t[:, 0:1] * s[0:1, :]
    for d in range(1, D):                          # tiny static unroll (D small)
      z = z + w1t[:, d:d + 1] * s[d:d + 1, :]
  h = jnp.tanh(z)                                  # EUP

  # ---- layer 2 of every model + ensemble mean: one mul + one sublane reduce.
  # Padded hidden rows have w1t = b1 = w2 = 0 so they contribute nothing;
  # all b2's are folded into the host-side constant mean_b2.
  p = jnp.sum(h * w2, axis=0, keepdims=True) * (1.0 / num_models) + mean_b2  # (1, TB)

  # ---- Lagrangian term H, vectorised over the batch tile (pure VPU) --------
  hterm = (-coef0 * c_ref[0:1, :] * s[5:6, :]
           - coef1 * c_ref[1:2, :] * (s[3:4, :] + s[4:5, :]))                # (1, TB)

  # ---- out = H + penalty[0] * P ** penalty[1] -------------------------------
  if pen1_int is not None:
    p_pow = _static_int_pow(p, pen1_int)           # integer power: VPU muls only
  else:
    p_pow = p ** pen1_float                        # fractional: keep torch.pow semantics
  o_ref[...] = hterm + pen0 * p_pow                # lane-dense (1, TB) store


def pack_ensemble(model_params, D, HID):
  """Pack the frozen ensemble into one lane-dense, VMEM-resident f32 slab.

  model_params: list of (w1:(D,HID), b1:(1,HID), w2:(HID,1), b2:(1,1)).
  Layout (Hs = round_up(M*HID, 8), Dp = round_up(D, 8), Cp = round_up(Dp+2, 128)):
    rows [i*HID, (i+1)*HID), cols [0, D)  : W1_i^T
    rows [i*HID, (i+1)*HID), col  Dp      : b1_i
    rows [i*HID, (i+1)*HID), col  Dp + 1  : W2_i
  All b2_i are folded into a single scalar mean_b2.
  """
  M = len(model_params)
  d_pad = _round_up(max(D, 1), _SUBLANE)
  hid_rows = _round_up(max(M * HID, 1), _SUBLANE)
  col_pad = _round_up(d_pad + 2, _LANE)
  slab = jnp.zeros((hid_rows, col_pad), jnp.float32)
  sum_b2 = 0.0
  for i, (w1, b1, w2, b2) in enumerate(model_params):
    r0 = i * HID
    slab = slab.at[r0:r0 + HID, :D].set(
        jnp.asarray(w1, jnp.float32).reshape(D, HID).T)
    slab = slab.at[r0:r0 + HID, d_pad].set(
        jnp.asarray(b1, jnp.float32).reshape(HID))
    slab = slab.at[r0:r0 + HID, d_pad + 1].set(
        jnp.asarray(w2, jnp.float32).reshape(HID))
    sum_b2 += float(jnp.asarray(b2, jnp.float32).reshape(()))
  return dict(slab=slab, mean_b2=sum_b2 / M, d_pad=d_pad,
              hid_rows=hid_rows, num_models=M, D=D, HID=HID)


@functools.partial(
    jax.jit,
    static_argnames=("D", "d_pad", "num_models", "mean_b2",
                     "coef0", "coef1", "pen0", "pen1_int", "pen1_float"))
def _lagmps_impl(C, s, slab, *, D, d_pad, num_models, mean_b2,
                 coef0, coef1, pen0, pen1_int, pen1_float):
  B = s.shape[0]
  b_pad = _round_up(max(B, 1), _TB)
  # Pad + transpose so the batch lives on the lane axis.  These fuse into this
  # jit (single dispatch), not separate per-call XLA ops.
  s_t = jnp.zeros((d_pad, b_pad), jnp.float32).at[:D, :B].set(
      jnp.transpose(s.astype(jnp.float32)))
  c_t = jnp.zeros((2, b_pad), jnp.float32).at[:, :B].set(
      jnp.transpose(C.astype(jnp.float32)))

  use_mxu = D > 32   # wide MPS parameter vectors: one MXU dot per tile instead
  kernel = functools.partial(
      _lagmps_kernel, D=D, d_pad=d_pad, num_models=num_models, mean_b2=mean_b2,
      coef0=coef0, coef1=coef1, pen0=pen0,
      pen1_int=pen1_int, pen1_float=pen1_float, use_mxu=use_mxu)

  out = pl.pallas_call(
      kernel,
      out_shape=jax.ShapeDtypeStruct((1, b_pad), jnp.float32),
      grid=(b_pad // _TB,),
      in_specs=[
          pl.BlockSpec((d_pad, _TB), lambda i: (0, i)),    # s tile
          pl.BlockSpec((2, _TB), lambda i: (0, i)),        # C tile
          pl.BlockSpec(slab.shape, lambda i: (0, 0)),      # resident weight slab
      ],
      out_specs=pl.BlockSpec((1, _TB), lambda i: (0, i)),  # lane-dense output
      compiler_params=pltpu.CompilerParams(
          dimension_semantics=("parallel",)),              # v7x: 2 TCs split the batch
  )(s_t, c_t, slab)
  return out[0, :B]


def lagmps_forward_batch(C, s, packed, *, N, penalty, bc):
  """Batched forward: C (B,2), s (B,D) -> (B,) f32."""
  D = packed["D"]
  if D < 6:
    raise ValueError("LagMPS_multi_XXZ reads s[0,3], s[0,4], s[0,5]; need D >= 6")
  if bc not in ("open", "periodic"):
    raise ValueError(f"unknown boundary condition: {bc!r}")
  pen0 = float(penalty[0])
  pen1_float = float(penalty[1])
  pen1_int = int(pen1_float) if pen1_float.is_integer() else None
  coef0 = float(N - 1) if bc == "open" else float(N)
  coef1 = float(N)
  return _lagmps_impl(
      jnp.asarray(C, jnp.float32).reshape(-1, 2),
      jnp.asarray(s, jnp.float32).reshape(-1, D),
      packed["slab"],
      D=D, d_pad=packed["d_pad"], num_models=packed["num_models"],
      mean_b2=packed["mean_b2"], coef0=coef0, coef1=coef1,
      pen0=pen0, pen1_int=pen1_int, pen1_float=pen1_float)


def lagmps_forward(C, s, packed, *, N, penalty, bc):
  """Single evaluation matching the PyTorch forward: C (2,), s (1,D) -> scalar."""
  out = lagmps_forward_batch(jnp.reshape(jnp.asarray(C, jnp.float32), (1, 2)),
                             jnp.reshape(jnp.asarray(s, jnp.float32), (1, -1)),
                             packed, N=N, penalty=penalty, bc=bc)
  return out[0]


def lagmps_reference_batch(C, s, model_params, *, N, penalty, bc):
  """Pure-JAX reference mirroring the PyTorch forward (elementwise, exact f32)."""
  C = jnp.asarray(C, jnp.float32)
  s = jnp.asarray(s, jnp.float32)
  P = 0.0
  for (w1, b1, w2, b2) in model_params:
    z = jnp.sum(s[:, :, None] * w1[None, :, :], axis=1) + b1            # (B, HID)
    P = P + jnp.sum(jnp.tanh(z) * w2[None, :, 0], axis=1) + b2[0, 0]    # (B,)
  P = P / len(model_params)
  coef0 = (N - 1) if bc == "open" else N
  H = -C[:, 0] * coef0 * s[:, 5] - N * C[:, 1] * (s[:, 3] + s[:, 4])
  return H + penalty[0] * P ** penalty[1]


if __name__ == "__main__":
  D, HID = 8, 32            # MPS parameter dim / inner-MLP hidden width
  M = 3                     # ensemble size == len(self.m)
  N = 8                     # chain length
  penalty = (10.0, 2)       # (coefficient, integer power)

  key = jax.random.PRNGKey(0)
  keys = jax.random.split(key, 2 + 4 * M)
  k_c, k_s = keys[0], keys[1]

  # Deterministic frozen ensemble `self.m`.
  model_params = []
  for i in range(M):
    kw1, kb1, kw2, kb2 = keys[2 + 4 * i: 2 + 4 * i + 4]
    w1 = 0.1 * jax.random.normal(kw1, (D, HID), dtype=jnp.float32)
    b1 = 0.1 * jax.random.normal(kb1, (1, HID), dtype=jnp.float32)
    w2 = 0.1 * jax.random.normal(kw2, (HID, 1), dtype=jnp.float32)
    b2 = 0.1 * jax.random.normal(kb2, (1, 1), dtype=jnp.float32)
    model_params.append((w1, b1, w2, b2))

  packed = pack_ensemble(model_params, D, HID)   # pack the frozen weights ONCE

  # Batched evaluation: 160 (C, s) pairs -> pads to 256 lanes, grid of 2 tiles
  # (on v7x the two TensorCores each take one tile).
  B = 160
  C_batch = jax.random.uniform(k_c, (B, 2), dtype=jnp.float32)
  s_batch = jax.random.normal(k_s, (B, D), dtype=jnp.float32)

  out_b = lagmps_forward_batch(C_batch, s_batch, packed,
                               N=N, penalty=penalty, bc="periodic")
  out_b = jax.block_until_ready(out_b)
  ref_b = lagmps_reference_batch(C_batch, s_batch, model_params,
                                 N=N, penalty=penalty, bc="periodic")
  assert out_b.shape == (B,)
  assert jnp.allclose(out_b, ref_b, atol=1e-4, rtol=1e-4), (
      "batched periodic mismatch", out_b[:4], ref_b[:4])

  # Single-shot evaluation matching the PyTorch module signature (bc='open').
  out_s = lagmps_forward(C_batch[0], s_batch[0:1], packed,
                         N=N, penalty=penalty, bc="open")
  out_s = jax.block_until_ready(out_s)
  ref_s = lagmps_reference_batch(C_batch[0:1], s_batch[0:1], model_params,
                                 N=N, penalty=penalty, bc="open")[0]
  assert jnp.allclose(out_s, ref_s, atol=1e-4, rtol=1e-4), (
      "single open mismatch", out_s, ref_s)

  print("KERNEL_OK")
</pallas_src>

<mosaic_0001>
module attributes {stable_mosaic.version = 11 : i64} {
  func.func @_lagmps_kernel(%arg0: i32, %arg1: memref<8x128xf32, #tpu.memory_space<vmem>>, %arg2: memref<2x128xf32, #tpu.memory_space<vmem>>, %arg3: memref<96x128xf32, #tpu.memory_space<vmem>>, %arg4: memref<1x128xf32, #tpu.memory_space<vmem>>) attributes {dimension_semantics = [#tpu.dimension_semantics<parallel>], iteration_bounds = array<i64: 2>, scalar_prefetch = 0 : i64, scratch_operands = 0 : i64, tpu.core_type = #tpu.core_type<tc>, window_params = [{transform_indices = @transform_0, window_bounds = array<i64: 8, 128>}, {transform_indices = @transform_1, window_bounds = array<i64: 2, 128>}, {pipeline_mode = #tpu.pipeline_mode<synchronous>, transform_indices = @transform_2, window_bounds = array<i64: 96, 128>}, {transform_indices = @transform_3, window_bounds = array<i64: 1, 128>}]} {
    %c0 = arith.constant 0 : index
    %c0_0 = arith.constant 0 : index
    %0 = vector.load %arg1[%c0, %c0_0] : memref<8x128xf32, #tpu.memory_space<vmem>>, vector<8x128xf32>
    %c0_1 = arith.constant 0 : index
    %c0_2 = arith.constant 0 : index
    %1 = vector.load %arg3[%c0_1, %c0_2] : memref<96x128xf32, #tpu.memory_space<vmem>>, vector<96x8xf32>
    %c0_3 = arith.constant 0 : index
    %c8 = arith.constant 8 : index
    %2 = vector.load %arg3[%c0_3, %c8] : memref<96x128xf32, #tpu.memory_space<vmem>>, vector<96x1xf32>
    %c0_4 = arith.constant 0 : index
    %c9 = arith.constant 9 : index
    %3 = vector.load %arg3[%c0_4, %c9] : memref<96x128xf32, #tpu.memory_space<vmem>>, vector<96x1xf32>
    %4 = vector.extract_strided_slice %1 {offsets = [0, 0], sizes = [96, 1], strides = [1, 1]} : vector<96x8xf32> to vector<96x1xf32>
    %5 = vector.extract_strided_slice %0 {offsets = [0, 0], sizes = [1, 128], strides = [1, 1]} : vector<8x128xf32> to vector<1x128xf32>
    %6 = vector.broadcast %4 : vector<96x1xf32> to vector<96x128xf32>
    %7 = vector.broadcast %5 : vector<1x128xf32> to vector<96x128xf32>
    %8 = arith.mulf %6, %7 : vector<96x128xf32>
    %9 = vector.broadcast %2 : vector<96x1xf32> to vector<96x128xf32>
    %10 = arith.addf %9, %8 : vector<96x128xf32>
    %11 = vector.extract_strided_slice %1 {offsets = [0, 1], sizes = [96, 1], strides = [1, 1]} : vector<96x8xf32> to vector<96x1xf32>
    %12 = vector.extract_strided_slice %0 {offsets = [1, 0], sizes = [1, 128], strides = [1, 1]} : vector<8x128xf32> to vector<1x128xf32>
    %13 = vector.broadcast %11 : vector<96x1xf32> to vector<96x128xf32>
    %14 = vector.broadcast %12 : vector<1x128xf32> to vector<96x128xf32>
    %15 = arith.mulf %13, %14 : vector<96x128xf32>
    %16 = arith.addf %10, %15 : vector<96x128xf32>
    %17 = vector.extract_strided_slice %1 {offsets = [0, 2], sizes = [96, 1], strides = [1, 1]} : vector<96x8xf32> to vector<96x1xf32>
    %18 = vector.extract_strided_slice %0 {offsets = [2, 0], sizes = [1, 128], strides = [1, 1]} : vector<8x128xf32> to vector<1x128xf32>
    %19 = vector.broadcast %17 : vector<96x1xf32> to vector<96x128xf32>
    %20 = vector.broadcast %18 : vector<1x128xf32> to vector<96x128xf32>
    %21 = arith.mulf %19, %20 : vector<96x128xf32>
    %22 = arith.addf %16, %21 : vector<96x128xf32>
    %23 = vector.extract_strided_slice %1 {offsets = [0, 3], sizes = [96, 1], strides = [1, 1]} : vector<96x8xf32> to vector<96x1xf32>
    %24 = vector.extract_strided_slice %0 {offsets = [3, 0], sizes = [1, 128], strides = [1, 1]} : vector<8x128xf32> to vector<1x128xf32>
    %25 = vector.broadcast %23 : vector<96x1xf32> to vector<96x128xf32>
    %26 = vector.broadcast %24 : vector<1x128xf32> to vector<96x128xf32>
    %27 = arith.mulf %25, %26 : vector<96x128xf32>
    %28 = arith.addf %22, %27 : vector<96x128xf32>
    %29 = vector.extract_strided_slice %1 {offsets = [0, 4], sizes = [96, 1], strides = [1, 1]} : vector<96x8xf32> to vector<96x1xf32>
    %30 = vector.extract_strided_slice %0 {offsets = [4, 0], sizes = [1, 128], strides = [1, 1]} : vector<8x128xf32> to vector<1x128xf32>
    %31 = vector.broadcast %29 : vector<96x1xf32> to vector<96x128xf32>
    %32 = vector.broadcast %30 : vector<1x128xf32> to vector<96x128xf32>
    %33 = arith.mulf %31, %32 : vector<96x128xf32>
    %34 = arith.addf %28, %33 : vector<96x128xf32>
    %35 = vector.extract_strided_slice %1 {offsets = [0, 5], sizes = [96, 1], strides = [1, 1]} : vector<96x8xf32> to vector<96x1xf32>
    %36 = vector.extract_strided_slice %0 {offsets = [5, 0], sizes = [1, 128], strides = [1, 1]} : vector<8x128xf32> to vector<1x128xf32>
    %37 = vector.broadcast %35 : vector<96x1xf32> to vector<96x128xf32>
    %38 = vector.broadcast %36 : vector<1x128xf32> to vector<96x128xf32>
    %39 = arith.mulf %37, %38 : vector<96x128xf32>
    %40 = arith.addf %34, %39 : vector<96x128xf32>
    %41 = vector.extract_strided_slice %1 {offsets = [0, 6], sizes = [96, 1], strides = [1, 1]} : vector<96x8xf32> to vector<96x1xf32>
    %42 = vector.extract_strided_slice %0 {offsets = [6, 0], sizes = [1, 128], strides = [1, 1]} : vector<8x128xf32> to vector<1x128xf32>
    %43 = vector.broadcast %41 : vector<96x1xf32> to vector<96x128xf32>
    %44 = vector.broadcast %42 : vector<1x128xf32> to vector<96x128xf32>
    %45 = arith.mulf %43, %44 : vector<96x128xf32>
    %46 = arith.addf %40, %45 : vector<96x128xf32>
    %47 = vector.extract_strided_slice %1 {offsets = [0, 7], sizes = [96, 1], strides = [1, 1]} : vector<96x8xf32> to vector<96x1xf32>
    %48 = vector.extract_strided_slice %0 {offsets = [7, 0], sizes = [1, 128], strides = [1, 1]} : vector<8x128xf32> to vector<1x128xf32>
    %49 = vector.broadcast %47 : vector<96x1xf32> to vector<96x128xf32>
    %50 = vector.broadcast %48 : vector<1x128xf32> to vector<96x128xf32>
    %51 = arith.mulf %49, %50 : vector<96x128xf32>
    %52 = arith.addf %46, %51 : vector<96x128xf32>
    %53 = math.tanh %52 : vector<96x128xf32>
    %54 = vector.broadcast %3 : vector<96x1xf32> to vector<96x128xf32>
    %55 = arith.mulf %53, %54 : vector<96x128xf32>
    %cst = arith.constant dense<0.000000e+00> : vector<128xf32>
    %56 = vector.multi_reduction <add>, %55, %cst [0] : vector<96x128xf32> to vector<128xf32>
    %57 = vector.shape_cast %56 : vector<128xf32> to vector<1x128xf32>
    %cst_5 = arith.constant 0.333333343 : f32
    %58 = vector.broadcast %cst_5 : f32 to vector<1x128xf32>
    %59 = arith.mulf %57, %58 : vector<1x128xf32>
    %cst_6 = arith.constant 0.00445252378 : f32
    %60 = vector.broadcast %cst_6 : f32 to vector<1x128xf32>
    %61 = arith.addf %59, %60 : vector<1x128xf32>
    %c0_7 = arith.constant 0 : index
    %c0_8 = arith.constant 0 : index
    %62 = vector.load %arg2[%c0_7, %c0_8] : memref<2x128xf32, #tpu.memory_space<vmem>>, vector<1x128xf32>
    %cst_9 = arith.constant -8.000000e+00 : f32
    %63 = vector.broadcast %cst_9 : f32 to vector<1x128xf32>
    %64 = arith.mulf %63, %62 : vector<1x128xf32>
    %65 = vector.extract_strided_slice %0 {offsets = [5, 0], sizes = [1, 128], strides = [1, 1]} : vector<8x128xf32> to vector<1x128xf32>
    %66 = arith.mulf %64, %65 : vector<1x128xf32>
    %c1 = arith.constant 1 : index
    %c0_10 = arith.constant 0 : index
    %67 = vector.load %arg2[%c1, %c0_10] : memref<2x128xf32, #tpu.memory_space<vmem>>, vector<1x128xf32>
    %cst_11 = arith.constant 8.000000e+00 : f32
    %68 = vector.broadcast %cst_11 : f32 to vector<1x128xf32>
    %69 = arith.mulf %68, %67 : vector<1x128xf32>
    %70 = vector.extract_strided_slice %0 {offsets = [3, 0], sizes = [1, 128], strides = [1, 1]} : vector<8x128xf32> to vector<1x128xf32>
    %71 = vector.extract_strided_slice %0 {offsets = [4, 0], sizes = [1, 128], strides = [1, 1]} : vector<8x128xf32> to vector<1x128xf32>
    %72 = arith.addf %70, %71 : vector<1x128xf32>
    %73 = arith.mulf %69, %72 : vector<1x128xf32>
    %74 = arith.subf %66, %73 : vector<1x128xf32>
    %75 = arith.mulf %61, %61 : vector<1x128xf32>
    %cst_12 = arith.constant 1.000000e+01 : f32
    %76 = vector.broadcast %cst_12 : f32 to vector<1x128xf32>
    %77 = arith.mulf %76, %75 : vector<1x128xf32>
    %78 = arith.addf %74, %77 : vector<1x128xf32>
    %c0_13 = arith.constant 0 : index
    %c0_14 = arith.constant 0 : index
    %79 = vector.load %arg4[%c0_13, %c0_14] : memref<1x128xf32, #tpu.memory_space<vmem>>, vector<1x128xf32>
    tpu.vector_store %arg4[%c0_13, %c0_14], %78 {strides = array<i32>} : memref<1x128xf32, #tpu.memory_space<vmem>>, vector<1x128xf32>,
    return
  }
  func.func @transform_0(%arg0: i32) -> (i32, i32) {
    %c0_i32 = arith.constant 0 : i32
    %c0_i32_0 = arith.constant 0 : i32
    return %c0_i32, %arg0 : i32, i32
  }
  func.func @transform_1(%arg0: i32) -> (i32, i32) {
    %c0_i32 = arith.constant 0 : i32
    %c0_i32_0 = arith.constant 0 : i32
    return %c0_i32, %arg0 : i32, i32
  }
  func.func @transform_2(%arg0: i32) -> (i32, i32) {
    %c0_i32 = arith.constant 0 : i32
    %c0_i32_0 = arith.constant 0 : i32
    %c0_i32_1 = arith.constant 0 : i32
    return %c0_i32, %c0_i32_0 : i32, i32
  }
  func.func @transform_3(%arg0: i32) -> (i32, i32) {
    %c0_i32 = arith.constant 0 : i32
    %c0_i32_0 = arith.constant 0 : i32
    return %c0_i32, %arg0 : i32, i32
  }
}

</mosaic_0001>

<bundles_post_ra>
// kernel: _lagmps_impl.1
= control target key start
LH: loop header
LB: loop body
LE: loop exit
PB: predicated region body
PF: predicated region fallthrough
CT: control target
= control target key end

     0   :  { %8 = vsyncpa [#allocation3], 0  ;;  %s1837_s0 = inlined_call_operand.vmem [shape: f32[8,256], index: 0, kind: input, shape index: {}]   ;;  %s1838_s1 = inlined_call_operand.vmem [shape: f32[2,256], index: 1, kind: input, shape index: {}]   ;;  %s1839_s2 = inlined_call_operand.hbm [shape: f32[96,128], index: 2, kind: input, shape index: {}]   ;;  %s1840_s3 = inlined_call_operand.hbm [shape: f32[1,256], index: 3, kind: output, shape index: {}]  }
   0x1   :  { %9 = vsyncpa [#allocation4], 0 }
   0x2   :  { %11 = vsyncpa [#allocation4 + $0x1], 0  ;;  %s1319_s12 = smov 0   ;;  %s1321_s13 = smov 0  }
   0x3   :  { %s1323_s14 = smov 0   ;;  %s1325_s15 = smov 0  }
   0x4 LB: > { %s1340_s16 = sadd.s32 4294967295, %s1284_s15   ;;  %s1059_s17 = sadd.s32 4294967294, %s1284_s15   ;;  %s1284_s15 = sphi %s1325_s15, %s1846_s15   ;;  %s1280_s14 = sphi %s1323_s14, %s1845_s14   ;;  %s1276_s13 = sphi %s1321_s13, %s1844_s13   ;;  %s1272_s12 = sphi %s1319_s12, %s1843_s12  }
   0x5   : > { %s1344_s18 = sadd.s32 1, %s1284_s15   ;;  %s97_s19 = sadd.s32 1, %s1280_s14 }
   0x6   : > { %s94_s20 = ssub.s32 %s1284_s15, %s1344_s18  ;;  %p107_p0 = scmp.ne.s32.totalorder %s1280_s14, %s1276_s13 }
   0x7   : > { %p95_p1 = scmp.eq.s32.totalorder %s94_s20, 0  ;;  %p108_p2 = scmp.eq.s32.totalorder %s1340_s16, 1 }
   0x8   : > { %p113_p3 = scmp.ne.s32.totalorder %s1276_s13, %s1272_s12  ;;  %p114_p4 = scmp.eq.s32.totalorder %s1059_s17, 1 }
   0x9   : > { %s1355_s21 = scalar_select %p95_p1, %s1280_s14, %s97_s19  }
   0xa   : > { %p1357_p5 = por %p108_p2, %p107_p0  ;;  %p1361_p6 = por %p114_p4, %p113_p3 }
   0xb   : > { %p1060_p7 = scmp.ge.s32.totalorder %s1284_s15, 1  ;;  %p121_p8 = scmp.lt.s32.totalorder %s1284_s15, 3 }
   0xc   : > { %p1083_p9 = scmp.eq.s32.totalorder %s1340_s16, 0  ;;  %s132_s26 = sshll.u32 %s1839_s2, 4  ;;  %s133_s26 = int_to_ptr.hbm [resolvable:$true] %s132_s26 }
   0xd   : > { %p122_p10 = pnand %p1060_p7, %p121_p8  ;;  %s1286_s27 = smov [#allocation2]  }
   0xe   : > { %s134_s28 = sshll.u32 %s1286_s27, 4  ;;  %s1287_s29 = smov 128   ;;  %s135_s28 = int_to_ptr.vmem [resolvable:$true] %s134_s28 }
   0xf   : > { %p1075_p11 = pneg %p122_p10  ;;  %s1288_s30 = smov 8  }
  0x10   : > { %164 = sbr.rel (%p122_p10) target bundleno = 523 (0x20b), region = 32 }
  0x11   : > { %p1076_p12 = pnand %p1083_p9, %p1075_p11 }
  0x13   : > { %1078 = dma.hbm_to_vmem [thread:$0]  (!%p1076_p12), %s133_s26, 1536, %s135_s28, [#allocation3], %s1287_s29, %s1287_s29, %s1288_s30  }
  0x15   : > { %1263 = dma.done.wait (%p1083_p9), [#allocation3], 1536  }
  0x16   : > { %1265 = vsyncadd (%p1083_p9), [#allocation3], 4294965760  ;;  %v1289_v0 = vmov 0   ;;  %v1377_v1 = vld [vmem:[#allocation2 + $0x20] sm:$0xff]  ;;  %v1379_v2 = vld [vmem:[#allocation2 + $0x10] sm:$0xff]  ;;  %v1290_v13 = vmov 8   ;;  %s976_s25 = scalar_lea.hbm %s1840_s3, %s1340_s16 }
  0x17   : > { %1133 = vset.pattern.permute.xlu2 %v1289_v0  ;;  %1132 = vset.pattern.permute.xlu1 %v1289_v0  ;;  %v1381_v3 = vld [vmem:[#allocation2] sm:$0xff]  ;;  %v1386_v4 = vld [vmem:[#allocation2 + $0x28] sm:$0xff]  ;;  %v1388_v5 = vld [vmem:[#allocation2 + $0x18] sm:$0xff]  ;;  %v1291_v14 = vmov 1   ;;  %v1292_v16 = vmov 2   ;;  %p191_p13 = scmp.lt.s32.totalorder %s1340_s16, 1 }
  0x18   : > { %1131 = vset.pattern.permute.xlu0 %v1289_v0  ;;  %234 = vperm.xlu2 %1133, %v1377_v1   ;;  %v1390_v6 = vld [vmem:[#allocation2 + $0x8] sm:$0xff]  ;;  %v1395_v7 = vld [vmem:[#allocation2 + $0x40] sm:$0xff]  ;;  %v1397_v8 = vld [vmem:[#allocation2 + $0x38] sm:$0xff]  ;;  %v1293_v23 = vmov 3   ;;  %v1294_v49 = vmov 4   ;;  %s189_s19 = sand.u32 1, %s1276_s13  }
  0x19   : > { %224 = vperm.xlu1 %1132, %v1379_v2   ;;  %214 = vperm.xlu0 %1131, %v1381_v3   ;;  %v1399_v9 = vld [vmem:[#allocation2 + $0x30] sm:$0xff]  ;;  %v1404_v10 = vld [vmem:[#allocation2 + $0x58] sm:$0xff]  ;;  %v1408_v12 = vld [vmem:[#allocation2 + $0x48] sm:$0xff]  ;;  %s1444_s4 = scalar_select %p191_p13, %s1340_s16, 1 }
  0x1a   : > { %v1406_v11 = vld [vmem:[#allocation2 + $0x50] sm:$0xff]  ;;  %s190_s26 = scalar_lea.vmem [#allocation5], %s189_s19  ;;  %s980_s28 = sshll.u32 %s976_s25, 4  ;;  %s981_s28 = int_to_ptr.hbm [resolvable:$true] %s980_s28 }
  0x1b   : > { %s1065_s5 = sshll.u32 %s1444_s4, 3  ;;  %s1066_s9 = sshll.u32 %s1444_s4, 1 }
  0x1c   : > { %s194_s8 = scalar_lea.vmem %s1837_s0, %s1065_s5  ;;  %s198_s17 = scalar_lea.vmem %s1838_s1, %s1066_s9 }
  0x1d   : > { %v1457_v21 = vld [vmem:[%s194_s8] sm:$0xff]  ;;  %s978_s27 = sshll.u32 %s190_s26, 4  ;;  %s968_s29 = scalar_lea.sflag [#allocation4], %s189_s19  ;;  %s979_s27 = int_to_ptr.vmem [resolvable:$true] %s978_s27 }
  0x1e   : > { %v1462_v24 = vperm.slane %v1457_v21, 0  ;;  %v1490_v50 = vperm.slane %v1457_v21, 1  ;;  %s1232_s30 = sshra.s32 %s981_s28, 4  ;;  %s1238_s6 = scalar_lea.hbm %s1840_s3, 2  ;;  %s1233_s30 = int_to_ptr.hbm [resolvable:$true] %s1232_s30 }
  0x1f   : > { %s1234_s4 = scalar_lea.hbm %s1233_s30, 1  ;;  %p1239_p3 = scmp.lt.s32.totalorder %s1233_s30, %s1840_s3 }
  0x20   : > { %239 = vperm.xlu2 %1133, %v1386_v4   ;;  %p1235_p0 = scmp.ne.s32.totalorder %s1233_s30, %s1234_s4  ;;  %p1240_p4 = scmp.lt.s32.totalorder %s1238_s6, %s1234_s4 }
  0x21   : > { %229 = vperm.xlu1 %1132, %v1388_v5   ;;  %219 = vperm.xlu0 %1131, %v1390_v6  }
  0x22   : > { %p1236_p1 = pnand %p1235_p0, %p1357_p5  ;;  %p1241_p7 = por %p1240_p4, %p1239_p3 }
  0x24   : > { %p1237_p2 = pneg %p1236_p1 }
  0x26   : > { %p1242_p8 = pnand %p1241_p7, %p1237_p2 }
  0x28   : > { %254 = vperm.xlu2 %1133, %v1395_v7  }
  0x29   : > { %249 = vperm.xlu1 %1132, %v1397_v8   ;;  %244 = vperm.xlu0 %1131, %v1399_v9  }
  0x30   : > { %269 = vperm.xlu2 %1133, %v1404_v10  }
  0x31   : > { %264 = vperm.xlu1 %1132, %v1406_v11   ;;  %259 = vperm.xlu0 %1131, %v1408_v12  }
  0x38   : > { %1136 = vset.pattern.permute.xlu2 %v1290_v13 }
  0x39   : > { %1135 = vset.pattern.permute.xlu1 %v1290_v13  ;;  %1134 = vset.pattern.permute.xlu0 %v1290_v13 }
  0x3a   : > { %294 = vperm.xlu2 %1136, %v1379_v2   ;;  %290 = vperm.xlu1 %1135, %v1390_v6  }
  0x3b   : > { %286 = vperm.xlu0 %1134, %v1381_v3  }
  0x42   : > { %302 = vperm.xlu2 %1136, %v1377_v1   ;;  %298 = vperm.xlu1 %1135, %v1388_v5  }
  0x43   : > { %306 = vperm.xlu0 %1134, %v1386_v4  }
  0x4a   : > { %314 = vperm.xlu2 %1136, %v1397_v8   ;;  %310 = vperm.xlu1 %1135, %v1399_v9  }
  0x4b   : > { %318 = vperm.xlu0 %1134, %v1395_v7  }
  0x52   : > { %326 = vperm.xlu2 %1136, %v1406_v11   ;;  %322 = vperm.xlu1 %1135, %v1408_v12  }
  0x53   : > { %330 = vperm.xlu0 %1134, %v1404_v10  }
  0x5a   : > { %1138 = vset.pattern.permute.xlu2 %v1291_v14  ;;  %1137 = vset.pattern.permute.xlu1 %v1291_v14 }
  0x5b   : > { %1139 = vset.pattern.permute.xlu0 %v1291_v14  ;;  %350 = vperm.xlu2 %1138, %v1390_v6  }
  0x5c   : > { %346 = vperm.xlu1 %1137, %v1381_v3   ;;  %354 = vperm.xlu0 %1139, %v1379_v2  }
  0x63   : > { %362 = vperm.xlu2 %1138, %v1377_v1  }
  0x64   : > { %358 = vperm.xlu1 %1137, %v1388_v5   ;;  %374 = vperm.xlu0 %1139, %v1397_v8  }
  0x6b   : > { %370 = vperm.xlu2 %1138, %v1399_v9  }
  0x6c   : > { %366 = vperm.xlu1 %1137, %v1386_v4   ;;  %386 = vperm.xlu0 %1139, %v1406_v11  }
  0x72   : > { %v235_v15 = vpop.permute.xlu2 %234 }
  0x73   : > { %382 = vperm.xlu2 %1138, %v1408_v12   ;;  %v277_v30 = vmul.f32 %v1462_v24, %v235_v15 }
  0x74   : > { %378 = vperm.xlu1 %1137, %v1395_v7   ;;  %1141 = vset.pattern.permute.xlu0 %v1292_v16 }
  0x75   : > { %423 = vperm.xlu0 %1141, %v1390_v6  }
  0x7a   : > { %v1437_v17 = vpop.permute.xlu2 %239 }
  0x7b   : > { %1140 = vset.pattern.permute.xlu2 %v1292_v16  ;;  %v278_v51 = vmul.f32 %v1462_v24, %v1437_v17 }
  0x7c   : > { %390 = vperm.xlu1 %1137, %v1404_v10   ;;  %419 = vperm.xlu2 %1140, %v1381_v3  }
  0x7d   : > { %443 = vperm.xlu0 %1141, %v1399_v9  }
  0x82   : > { %v1446_v18 = vpop.permute.xlu2 %254 }
  0x83   : > { %v281_v61 = vmul.f32 %v1462_v24, %v1446_v18 }
  0x84   : > { %1142 = vset.pattern.permute.xlu1 %v1292_v16  ;;  %431 = vperm.xlu2 %1140, %v1388_v5  }
  0x85   : > { %427 = vperm.xlu1 %1142, %v1379_v2   ;;  %455 = vperm.xlu0 %1141, %v1408_v12  }
  0x8a   : > { %v1455_v20 = vpop.permute.xlu2 %269 }
  0x8b   : > { %v225_v19 = vpop.permute.xlu1 %224  ;;  %v215_v22 = vpop.permute.xlu0 %214  ;;  %v284_v18 = vmul.f32 %v1462_v24, %v1455_v20 }
  0x8c   : > { %439 = vperm.xlu2 %1140, %v1386_v4   ;;  %v275_v25 = vmul.f32 %v1462_v24, %v225_v19  ;;  %v273_v40 = vmul.f32 %v1462_v24, %v215_v22 }
  0x8d   : > { %435 = vperm.xlu1 %1142, %v1377_v1   ;;  %1143 = vset.pattern.permute.xlu0 %v1293_v23 }
  0x8e   : > { %492 = vperm.xlu0 %1143, %v1381_v3  }
  0x93   : > { %v230_v26 = vpop.permute.xlu1 %229  ;;  %v220_v28 = vpop.permute.xlu0 %219 }
  0x94   : > { %v295_v27 = vpop.permute.xlu2 %294  ;;  %451 = vperm.xlu2 %1140, %v1395_v7   ;;  %v274_v41 = vmul.f32 %v1462_v24, %v220_v28  ;;  %v276_v52 = vmul.f32 %v1462_v24, %v230_v26  ;;  %v1295_v28 = vmov 5  }
  0x95   : > { %v1466_v29 = vadd.f32 %v295_v27, %v275_v25  ;;  %447 = vperm.xlu1 %1142, %v1397_v8  }
  0x96   : > { %512 = vperm.xlu0 %1143, %v1386_v4  }
  0x9b   : > { %v250_v31 = vpop.permute.xlu1 %249  ;;  %v245_v33 = vpop.permute.xlu0 %244 }
  0x9c   : > { %v303_v32 = vpop.permute.xlu2 %302  ;;  %463 = vperm.xlu2 %1140, %v1404_v10   ;;  %v280_v35 = vmul.f32 %v1462_v24, %v250_v31  ;;  %v279_v60 = vmul.f32 %v1462_v24, %v245_v33 }
  0x9d   : > { %v337_v34 = vadd.f32 %v303_v32, %v277_v30  ;;  %459 = vperm.xlu1 %1142, %v1406_v11  }
  0x9e   : > { %524 = vperm.xlu0 %1143, %v1395_v7  }
  0xa3   : > { %v265_v36 = vpop.permute.xlu1 %264  ;;  %v260_v38 = vpop.permute.xlu0 %259 }
  0xa4   : > { %v315_v37 = vpop.permute.xlu2 %314  ;;  %1145 = vset.pattern.permute.xlu2 %v1293_v23  ;;  %v283_v42 = vmul.f32 %v1462_v24, %v265_v36  ;;  %v282_v17 = vmul.f32 %v1462_v24, %v260_v38  ;;  %v1537_v38 = vperm.slane %v1457_v21, 2 }
  0xa5   : > { %v1476_v39 = vadd.f32 %v315_v37, %v280_v35  ;;  %1144 = vset.pattern.permute.xlu1 %v1293_v23  ;;  %500 = vperm.xlu2 %1145, %v1379_v2  }
  0xa6   : > { %496 = vperm.xlu1 %1144, %v1390_v6   ;;  %536 = vperm.xlu0 %1143, %v1404_v10  }
  0xac   : > { %v327_v43 = vpop.permute.xlu2 %326  ;;  %v291_v45 = vpop.permute.xlu1 %290 }
  0xad   : > { %v1484_v44 = vadd.f32 %v327_v43, %v283_v42  ;;  %v287_v46 = vpop.permute.xlu0 %286  ;;  %v334_v47 = vadd.f32 %v291_v45, %v274_v41  ;;  %508 = vperm.xlu2 %1145, %v1377_v1  }
  0xae   : > { %v333_v48 = vadd.f32 %v287_v46, %v273_v40  ;;  %504 = vperm.xlu1 %1144, %v1388_v5   ;;  %1148 = vset.pattern.permute.xlu0 %v1294_v49 }
  0xaf   : > { %573 = vperm.xlu0 %1148, %v1379_v2  }
  0xb4   : > { %v299_v53 = vpop.permute.xlu1 %298 }
  0xb5   : > { %v307_v54 = vpop.permute.xlu0 %306  ;;  %v336_v55 = vadd.f32 %v299_v53, %v276_v52  ;;  %v351_v57 = vpop.permute.xlu2 %350  ;;  %520 = vperm.xlu2 %1145, %v1397_v8  }
  0xb6   : > { %v1495_v56 = vadd.f32 %v307_v54, %v278_v51  ;;  %516 = vperm.xlu1 %1144, %v1399_v9   ;;  %v395_v58 = vmul.f32 %v1490_v50, %v351_v57 }
  0xb7   : > { %593 = vperm.xlu0 %1148, %v1397_v8  }
  0xb8   : > { %v1501_v59 = vadd.f32 %v395_v58, %v334_v47  ;;  %v1296_v58 = vmov 6  }
  0xbc   : > { %v311_v62 = vpop.permute.xlu1 %310 }
  0xbd   : > { %v319_v63 = vpop.permute.xlu0 %318  ;;  %v339_v0 = vadd.f32 %v311_v62, %v279_v60  ;;  %v363_v14 = vpop.permute.xlu2 %362  ;;  %532 = vperm.xlu2 %1145, %v1406_v11  }
  0xbe   : > { %v1506_v13 = vadd.f32 %v319_v63, %v281_v61  ;;  %528 = vperm.xlu1 %1144, %v1408_v12   ;;  %v398_v15 = vmul.f32 %v1490_v50, %v363_v14 }
  0xbf   : > { %605 = vperm.xlu0 %1148, %v1406_v11  }
  0xc0   : > { %v1512_v16 = vadd.f32 %v398_v15, %v337_v34 }
  0xc4   : > { %v323_v19 = vpop.permute.xlu1 %322 }
  0xc5   : > { %v331_v22 = vpop.permute.xlu0 %330  ;;  %v342_v23 = vadd.f32 %v323_v19, %v282_v17  ;;  %v371_v26 = vpop.permute.xlu2 %370  ;;  %1147 = vset.pattern.permute.xlu2 %v1294_v49 }
  0xc6   : > { %v1517_v25 = vadd.f32 %v331_v22, %v284_v18  ;;  %1146 = vset.pattern.permute.xlu1 %v1294_v49  ;;  %v400_v27 = vmul.f32 %v1490_v50, %v371_v26  ;;  %569 = vperm.xlu2 %1147, %v1390_v6  }
  0xc7   : > { %565 = vperm.xlu1 %1146, %v1381_v3   ;;  %1150 = vset.pattern.permute.xlu0 %v1295_v28 }
  0xc8   : > { %v1522_v30 = vadd.f32 %v400_v27, %v339_v0  ;;  %642 = vperm.xlu0 %1150, %v1390_v6  }
  0xcd   : > { %v383_v20 = vpop.permute.xlu2 %382 }
  0xce   : > { %v347_v24 = vpop.permute.xlu1 %346  ;;  %v403_v31 = vmul.f32 %v1490_v50, %v383_v20  ;;  %v355_v33 = vpop.permute.xlu0 %354  ;;  %581 = vperm.xlu2 %1147, %v1377_v1  }
  0xcf   : > { %v394_v32 = vmul.f32 %v1490_v50, %v347_v24  ;;  %577 = vperm.xlu1 %1146, %v1388_v5   ;;  %v396_v34 = vmul.f32 %v1490_v50, %v355_v33 }
  0xd0   : > { %v1530_v35 = vadd.f32 %v403_v31, %v342_v23  ;;  %662 = vperm.xlu0 %1150, %v1399_v9  }
  0xd1   : > { %v406_v36 = vadd.f32 %v394_v32, %v333_v48  ;;  %v1534_v37 = vadd.f32 %v396_v34, %v1466_v29 }
  0xd6   : > { %v359_v40 = vpop.permute.xlu1 %358  ;;  %v375_v42 = vpop.permute.xlu0 %374  ;;  %589 = vperm.xlu2 %1147, %v1399_v9  }
  0xd7   : > { %v397_v41 = vmul.f32 %v1490_v50, %v359_v40  ;;  %v420_v43 = vpop.permute.xlu2 %419  ;;  %585 = vperm.xlu1 %1146, %v1386_v4   ;;  %v401_v45 = vmul.f32 %v1490_v50, %v375_v42 }
  0xd8   : > { %v467_v46 = vmul.f32 %v1537_v38, %v420_v43  ;;  %674 = vperm.xlu0 %1150, %v1408_v12  }
  0xd9   : > { %v409_v47 = vadd.f32 %v397_v41, %v336_v55  ;;  %v1546_v29 = vadd.f32 %v401_v45, %v1476_v39 }
  0xda   : > { %v1548_v48 = vadd.f32 %v467_v46, %v406_v36  ;;  %v1594_v36 = vperm.slane %v1457_v21, 3 }
  0xde   : > { %v367_v49 = vpop.permute.xlu1 %366  ;;  %v387_v52 = vpop.permute.xlu0 %386  ;;  %601 = vperm.xlu2 %1147, %v1408_v12  }
  0xdf   : > { %v399_v51 = vmul.f32 %v1490_v50, %v367_v49  ;;  %v432_v53 = vpop.permute.xlu2 %431  ;;  %597 = vperm.xlu1 %1146, %v1395_v7   ;;  %v404_v54 = vmul.f32 %v1490_v50, %v387_v52 }
  0xe0   : > { %v470_v55 = vmul.f32 %v1537_v38, %v432_v53  ;;  %1152 = vset.pattern.permute.xlu0 %v1296_v58 }
  0xe1   : > { %v411_v57 = vadd.f32 %v399_v51, %v1495_v56  ;;  %v1558_v39 = vadd.f32 %v404_v54, %v1484_v44  ;;  %711 = vperm.xlu0 %1152, %v1381_v3  }
  0xe2   : > { %v1560_v60 = vadd.f32 %v470_v55, %v409_v47 }
  0xe6   : > { %v379_v61 = vpop.permute.xlu1 %378  ;;  %1149 = vset.pattern.permute.xlu2 %v1295_v28 }
  0xe7   : > { %v402_v62 = vmul.f32 %v1490_v50, %v379_v61  ;;  %v440_v63 = vpop.permute.xlu2 %439  ;;  %609 = vperm.xlu1 %1146, %v1404_v10   ;;  %v424_v56 = vpop.permute.xlu0 %423  ;;  %638 = vperm.xlu2 %1149, %v1381_v3  }
  0xe8   : > { %v472_v0 = vmul.f32 %v1537_v38, %v440_v63  ;;  %v468_v44 = vmul.f32 %v1537_v38, %v424_v56 }
  0xe9   : > { %v414_v14 = vadd.f32 %v402_v62, %v1506_v13  ;;  %731 = vperm.xlu0 %1152, %v1386_v4   ;;  %v1298_v62 = vmov 7  }
  0xea   : > { %v484_v15 = vadd.f32 %v472_v0, %v411_v57  ;;  %v1571_v17 = vadd.f32 %v468_v44, %v1501_v59 }
  0xee   : > { %v391_v18 = vpop.permute.xlu1 %390 }
  0xef   : > { %v405_v19 = vmul.f32 %v1490_v50, %v391_v18  ;;  %v452_v22 = vpop.permute.xlu2 %451  ;;  %1151 = vset.pattern.permute.xlu1 %v1295_v28  ;;  %v444_v26 = vpop.permute.xlu0 %443  ;;  %650 = vperm.xlu2 %1149, %v1388_v5  }
  0xf0   : > { %v475_v23 = vmul.f32 %v1537_v38, %v452_v22  ;;  %646 = vperm.xlu1 %1151, %v1379_v2   ;;  %v473_v27 = vmul.f32 %v1537_v38, %v444_v26 }
  0xf1   : > { %v417_v13 = vadd.f32 %v405_v19, %v1517_v25  ;;  %743 = vperm.xlu0 %1152, %v1395_v7  }
  0xf2   : > { %v487_v20 = vadd.f32 %v475_v23, %v414_v14  ;;  %v1581_v59 = vadd.f32 %v473_v27, %v1522_v30 }
  0xf7   : > { %v464_v50 = vpop.permute.xlu2 %463  ;;  %v428_v24 = vpop.permute.xlu1 %427  ;;  %658 = vperm.xlu2 %1149, %v1386_v4  }
  0xf8   : > { %v478_v28 = vmul.f32 %v1537_v38, %v464_v50  ;;  %v469_v31 = vmul.f32 %v1537_v38, %v428_v24  ;;  %v456_v32 = vpop.permute.xlu0 %455  ;;  %654 = vperm.xlu1 %1151, %v1377_v1   ;;  %v1638_v50 = vperm.slane %v1457_v21, 4 }
  0xf9   : > { %v476_v25 = vmul.f32 %v1537_v38, %v456_v32  ;;  %755 = vperm.xlu0 %1152, %v1404_v10  }
  0xfa   : > { %v490_v33 = vadd.f32 %v478_v28, %v417_v13  ;;  %v481_v34 = vadd.f32 %v469_v31, %v1534_v37 }
  0xfb   : > { %v1591_v30 = vadd.f32 %v476_v25, %v1530_v35  ;;  %v1297_v35 = vmov 9  }
  0xff   : > { %v436_v40 = vpop.permute.xlu1 %435  ;;  %670 = vperm.xlu2 %1149, %v1395_v7   ;;  %v501_v42 = vpop.permute.xlu2 %500 }
 0x100   : > { %v471_v41 = vmul.f32 %v1537_v38, %v436_v40  ;;  %666 = vperm.xlu1 %1151, %v1397_v8   ;;  %v542_v43 = vmul.f32 %v1594_v36, %v501_v42  ;;  %v493_v45 = vpop.permute.xlu0 %492 }
 0x101   : > { %v540_v46 = vmul.f32 %v1594_v36, %v493_v45  ;;  %1157 = vset.pattern.permute.xlu0 %v1297_v35 }
 0x102   : > { %v483_v37 = vadd.f32 %v471_v41, %v1512_v16  ;;  %v554_v47 = vadd.f32 %v542_v43, %v481_v34  ;;  %869 = vperm.xlu0 %1157, %v1381_v3  }
 0x103   : > { %v1605_v49 = vadd.f32 %v540_v46, %v1548_v48 }
 0x107   : > { %v448_v51 = vpop.permute.xlu1 %447  ;;  %682 = vperm.xlu2 %1149, %v1404_v10   ;;  %v509_v53 = vpop.permute.xlu2 %508 }
 0x108   : > { %v474_v52 = vmul.f32 %v1537_v38, %v448_v51  ;;  %678 = vperm.xlu1 %1151, %v1406_v11   ;;  %v544_v16 = vmul.f32 %v1594_v36, %v509_v53  ;;  %v513_v54 = vpop.permute.xlu0 %512 }
 0x109   : > { %v545_v57 = vmul.f32 %v1594_v36, %v513_v54 }
 0x10a   : > { %v486_v55 = vadd.f32 %v474_v52, %v1546_v29  ;;  %v556_v61 = vadd.f32 %v544_v16, %v483_v37  ;;  %1158 = vset.pattern.permute.xlu0 %v1298_v62 }
 0x10b   : > { %v1614_v48 = vadd.f32 %v545_v57, %v484_v15  ;;  %792 = vperm.xlu0 %1158, %v1379_v2  }
 0x10f   : > { %v460_v63 = vpop.permute.xlu1 %459  ;;  %1154 = vset.pattern.permute.xlu2 %v1296_v58  ;;  %v521_v56 = vpop.permute.xlu2 %520 }
 0x110   : > { %v477_v0 = vmul.f32 %v1537_v38, %v460_v63  ;;  %1153 = vset.pattern.permute.xlu1 %v1296_v58  ;;  %v547_v29 = vmul.f32 %v1594_v36, %v521_v56  ;;  %v525_v14 = vpop.permute.xlu0 %524  ;;  %719 = vperm.xlu2 %1154, %v1379_v2  }
 0x111   : > { %715 = vperm.xlu1 %1153, %v1390_v6   ;;  %v548_v15 = vmul.f32 %v1594_v36, %v525_v14 }
 0x112   : > { %v489_v44 = vadd.f32 %v477_v0, %v1558_v39  ;;  %v559_v18 = vadd.f32 %v547_v29, %v486_v55 }
 0x113   : > { %v1625_v19 = vadd.f32 %v548_v15, %v487_v20  ;;  %812 = vperm.xlu0 %1158, %v1397_v8  }
 0x117   : > { %v533_v38 = vpop.permute.xlu2 %532 }
 0x118   : > { %v497_v22 = vpop.permute.xlu1 %496  ;;  %v550_v58 = vmul.f32 %v1594_v36, %v533_v38  ;;  %v537_v26 = vpop.permute.xlu0 %536  ;;  %727 = vperm.xlu2 %1154, %v1377_v1  }
 0x119   : > { %v541_v23 = vmul.f32 %v1594_v36, %v497_v22  ;;  %723 = vperm.xlu1 %1153, %v1388_v5   ;;  %v551_v39 = vmul.f32 %v1594_v36, %v537_v26 }
 0x11a   : > { %v562_v13 = vadd.f32 %v550_v58, %v489_v44 }
 0x11b   : > { %v553_v27 = vadd.f32 %v541_v23, %v1571_v17  ;;  %v1634_v20 = vadd.f32 %v551_v39, %v490_v33  ;;  %824 = vperm.xlu0 %1158, %v1406_v11  }
 0x120   : > { %v505_v24 = vpop.permute.xlu1 %504  ;;  %739 = vperm.xlu2 %1154, %v1397_v8   ;;  %v570_v31 = vpop.permute.xlu2 %569 }
 0x121   : > { %v543_v28 = vmul.f32 %v1594_v36, %v505_v24  ;;  %735 = vperm.xlu1 %1153, %v1399_v9   ;;  %v614_v32 = vmul.f32 %v1638_v50, %v570_v31  ;;  %v574_v25 = vpop.permute.xlu0 %573 }
 0x122   : > { %v615_v33 = vmul.f32 %v1638_v50, %v574_v25 }
 0x123   : > { %v555_v17 = vadd.f32 %v543_v28, %v1560_v60  ;;  %v1646_v34 = vadd.f32 %v614_v32, %v553_v27  ;;  %1163 = vset.pattern.permute.xlu0 %v1297_v35 }
 0x124   : > { %v1649_v40 = vadd.f32 %v615_v33, %v554_v47  ;;  %901 = vperm.xlu0 %1163, %v1395_v7  }
 0x128   : > { %v517_v41 = vpop.permute.xlu1 %516  ;;  %751 = vperm.xlu2 %1154, %v1406_v11   ;;  %v582_v43 = vpop.permute.xlu2 %581 }
 0x129   : > { %v546_v42 = vmul.f32 %v1594_v36, %v517_v41  ;;  %747 = vperm.xlu1 %1153, %v1408_v12   ;;  %v617_v60 = vmul.f32 %v1638_v50, %v582_v43  ;;  %v594_v45 = vpop.permute.xlu0 %593 }
 0x12a   : > { %v620_v46 = vmul.f32 %v1638_v50, %v594_v45 }
 0x12b   : > { %v558_v37 = vadd.f32 %v546_v42, %v1581_v59  ;;  %v1658_v51 = vadd.f32 %v617_v60, %v556_v61 }
 0x12c   : > { %v1660_v47 = vadd.f32 %v620_v46, %v559_v18 }
 0x130   : > { %v529_v52 = vpop.permute.xlu1 %528  ;;  %1156 = vset.pattern.permute.xlu2 %v1298_v62  ;;  %v590_v16 = vpop.permute.xlu2 %589 }
 0x131   : > { %v549_v53 = vmul.f32 %v1594_v36, %v529_v52  ;;  %1155 = vset.pattern.permute.xlu1 %v1298_v62  ;;  %v619_v54 = vmul.f32 %v1638_v50, %v590_v16  ;;  %v606_v55 = vpop.permute.xlu0 %605  ;;  %788 = vperm.xlu2 %1156, %v1390_v6  }
 0x132   : > { %784 = vperm.xlu1 %1155, %v1381_v3   ;;  %v623_v57 = vmul.f32 %v1638_v50, %v606_v55 }
 0x133   : > { %v561_v59 = vadd.f32 %v549_v53, %v1591_v30  ;;  %v1670_v61 = vadd.f32 %v619_v54, %v558_v37  ;;  %v1682_v30 = vperm.slane %v1457_v21, 5 }
 0x134   : > { %v1672_v63 = vadd.f32 %v623_v57, %v562_v13 }
 0x138   : > { %v602_v36 = vpop.permute.xlu2 %601 }
 0x139   : > { %v566_v0 = vpop.permute.xlu1 %565  ;;  %v622_v56 = vmul.f32 %v1638_v50, %v602_v36  ;;  %800 = vperm.xlu2 %1156, %v1377_v1  }
 0x13a   : > { %v613_v29 = vmul.f32 %v1638_v50, %v566_v0  ;;  %796 = vperm.xlu1 %1155, %v1388_v5  }
 0x13b   : > { %v1678_v14 = vadd.f32 %v622_v56, %v561_v59 }
 0x13c   : > { %v625_v3 = vadd.f32 %v613_v29, %v1605_v49 }
 0x141   : > { %v578_v44 = vpop.permute.xlu1 %577  ;;  %808 = vperm.xlu2 %1156, %v1399_v9   ;;  %v639_v18 = vpop.permute.xlu2 %638 }
 0x142   : > { %v616_v15 = vmul.f32 %v1638_v50, %v578_v44  ;;  %804 = vperm.xlu1 %1155, %v1386_v4   ;;  %v686_v38 = vmul.f32 %v1682_v30, %v639_v18 }
 0x144   : > { %v628_v22 = vadd.f32 %v616_v15, %v555_v17  ;;  %v1688_v58 = vadd.f32 %v686_v38, %v625_v3 }
 0x149   : > { %v586_v23 = vpop.permute.xlu1 %585  ;;  %820 = vperm.xlu2 %1156, %v1408_v12   ;;  %v651_v49 = vpop.permute.xlu2 %650 }
 0x14a   : > { %v618_v26 = vmul.f32 %v1638_v50, %v586_v23  ;;  %816 = vperm.xlu1 %1155, %v1395_v7   ;;  %v689_v39 = vmul.f32 %v1682_v30, %v651_v49 }
 0x14c   : > { %v630_v13 = vadd.f32 %v618_v26, %v1614_v48  ;;  %v701_v27 = vadd.f32 %v689_v39, %v628_v22 }
 0x151   : > { %v598_v24 = vpop.permute.xlu1 %597  ;;  %1160 = vset.pattern.permute.xlu2 %v1297_v35  ;;  %v659_v31 = vpop.permute.xlu2 %658 }
 0x152   : > { %v621_v28 = vmul.f32 %v1638_v50, %v598_v24  ;;  %1159 = vset.pattern.permute.xlu1 %v1297_v35  ;;  %v691_v32 = vmul.f32 %v1682_v30, %v659_v31  ;;  %877 = vperm.xlu2 %1160, %v1379_v2  }
 0x153   : > { %873 = vperm.xlu1 %1159, %v1390_v6  }
 0x154   : > { %v633_v7 = vadd.f32 %v621_v28, %v1625_v19  ;;  %v1702_v25 = vadd.f32 %v691_v32, %v630_v13  ;;  %v1760_v32 = vperm.slane %v1457_v21, 7 }
 0x159   : > { %v610_v48 = vpop.permute.xlu1 %609  ;;  %v671_v33 = vpop.permute.xlu2 %670 }
 0x15a   : > { %v624_v17 = vmul.f32 %v1638_v50, %v610_v48  ;;  %v694_v41 = vmul.f32 %v1682_v30, %v671_v33  ;;  %885 = vperm.xlu2 %1160, %v1377_v1  }
 0x15b   : > { %881 = vperm.xlu1 %1159, %v1388_v5   ;;  %v643_v5 = vpop.permute.xlu0 %642 }
 0x15c   : > { %v636_v42 = vadd.f32 %v624_v17, %v1634_v20  ;;  %v1709_v43 = vadd.f32 %v694_v41, %v633_v7  ;;  %v1720_v20 = vperm.slane %v1457_v21, 6  ;;  %v687_v59 = vmul.f32 %v1682_v30, %v643_v5 }
 0x161   : > { %v683_v2 = vpop.permute.xlu2 %682 }
 0x162   : > { %v647_v6 = vpop.permute.xlu1 %646  ;;  %v697_v19 = vmul.f32 %v1682_v30, %v683_v2  ;;  %1161 = vset.pattern.permute.xlu2 %v1298_v62 }
 0x163   : > { %v688_v60 = vmul.f32 %v1682_v30, %v647_v6  ;;  %889 = vperm.xlu1 %1159, %v1386_v4   ;;  %828 = vperm.xlu2 %1161, %v1404_v10  }
 0x164   : > { %v1716_v50 = vadd.f32 %v697_v19, %v636_v42 }
 0x165   : > { %v700_v1 = vadd.f32 %v688_v60, %v1649_v40  ;;  %v663_v40 = vpop.permute.xlu0 %662 }
 0x16a   : > { %v655_v45 = vpop.permute.xlu1 %654  ;;  %v720_v46 = vpop.permute.xlu2 %719 }
 0x16b   : > { %v690_v37 = vmul.f32 %v1682_v30, %v655_v45  ;;  %893 = vperm.xlu1 %1159, %v1399_v9   ;;  %v761_v62 = vmul.f32 %v1720_v20, %v720_v46  ;;  %1162 = vset.pattern.permute.xlu2 %v1297_v35 }
 0x16c   : > { %897 = vperm.xlu2 %1162, %v1397_v8  }
 0x16d   : > { %v702_v4 = vadd.f32 %v690_v37, %v1658_v51  ;;  %v773_v52 = vadd.f32 %v761_v62, %v700_v1  ;;  %v1736_v51 = vpop.permute.xlu0 %674 }
 0x172   : > { %v667_v53 = vpop.permute.xlu1 %666  ;;  %v728_v9 = vpop.permute.xlu2 %727 }
 0x173   : > { %v693_v16 = vmul.f32 %v1682_v30, %v667_v53  ;;  %905 = vperm.xlu1 %1159, %v1408_v12   ;;  %v763_v5 = vmul.f32 %v1720_v20, %v728_v9 }
 0x174   : > { %909 = vperm.xlu2 %1162, %v1406_v11  }
 0x175   : > { %v1731_v54 = vadd.f32 %v693_v16, %v1660_v47  ;;  %v699_v47 = vadd.f32 %v687_v59, %v1646_v34  ;;  %v712_v36 = vpop.permute.xlu0 %711 }
 0x176   : > { %v759_v31 = vmul.f32 %v1720_v20, %v712_v36 }
 0x178   : > { %v771_v33 = vadd.f32 %v759_v31, %v1688_v58  ;;  %v775_v58 = vadd.f32 %v763_v5, %v702_v4 }
 0x17a   : > { %v679_v55 = vpop.permute.xlu1 %678  ;;  %v1742_v57 = vpop.permute.xlu2 %739 }
 0x17b   : > { %v696_v35 = vmul.f32 %v1682_v30, %v679_v55  ;;  %913 = vperm.xlu1 %1159, %v1404_v10  }
 0x17d   : > { %v1739_v8 = vadd.f32 %v696_v35, %v1672_v63  ;;  %v692_v63 = vmul.f32 %v1682_v30, %v663_v40  ;;  %v732_v44 = vpop.permute.xlu0 %731 }
 0x17e   : > { %v764_v53 = vmul.f32 %v1720_v20, %v732_v44 }
 0x17f   : > { %v704_v18 = vadd.f32 %v692_v63, %v1670_v61  ;;  %v766_v63 = vmul.f32 %v1720_v20, %v1742_v57  ;;  %v695_v57 = vmul.f32 %v1682_v30, %v1736_v51 }
 0x180   : > { %v776_v36 = vadd.f32 %v764_v53, %v1702_v25 }
 0x182   : > { %v1746_v56 = vpop.permute.xlu2 %751 }
 0x183   : > { %v716_v12 = vpop.permute.xlu1 %715 }
 0x184   : > { %v760_v11 = vmul.f32 %v1720_v20, %v716_v12 }
 0x185   : > { %v744_v23 = vpop.permute.xlu0 %743 }
 0x186   : > { %v772_v0 = vadd.f32 %v760_v11, %v699_v47 }
 0x18b   : > { %v724_v29 = vpop.permute.xlu1 %723  ;;  %v789_v22 = vpop.permute.xlu2 %788 }
 0x18c   : > { %v762_v10 = vmul.f32 %v1720_v20, %v724_v29  ;;  %v833_v41 = vmul.f32 %v1760_v32, %v789_v22 }
 0x18d   : > { %v1756_v39 = vpop.permute.xlu0 %755 }
 0x18e   : > { %v774_v3 = vadd.f32 %v762_v10, %v701_v27  ;;  %v845_v6 = vadd.f32 %v833_v41, %v772_v0 }
 0x193   : > { %v736_v15 = vpop.permute.xlu1 %735  ;;  %v801_v49 = vpop.permute.xlu2 %800 }
 0x194   : > { %v765_v38 = vmul.f32 %v1720_v20, %v736_v15  ;;  %v836_v37 = vmul.f32 %v1760_v32, %v801_v49 }
 0x195   : > { %v870_v27 = vpop.permute.xlu0 %869 }
 0x196   : > { %v1752_v34 = vadd.f32 %v765_v38, %v704_v18  ;;  %v848_v16 = vadd.f32 %v836_v37, %v775_v58  ;;  %v767_v18 = vmul.f32 %v1720_v20, %v744_v23 }
 0x19b   : > { %v1754_v26 = vpop.permute.xlu1 %747  ;;  %v809_v24 = vpop.permute.xlu2 %808 }
 0x19c   : > { %v838_v38 = vmul.f32 %v1760_v32, %v809_v24 }
 0x19d   : > { %v793_v17 = vpop.permute.xlu0 %792 }
 0x19e   : > { %v834_v42 = vmul.f32 %v1760_v32, %v793_v17  ;;  %v850_v23 = vadd.f32 %v838_v38, %v1752_v34  ;;  %v768_v17 = vmul.f32 %v1720_v20, %v1754_v26 }
 0x1a0   : > { %v846_v60 = vadd.f32 %v834_v42, %v773_v52 }
 0x1a3   : > { %v1762_v61 = vpop.permute.xlu2 %820 }
 0x1a4   : > { %v785_v13 = vpop.permute.xlu1 %784  ;;  %v841_v30 = vmul.f32 %v1760_v32, %v1762_v61 }
 0x1a5   : > { %v832_v48 = vmul.f32 %v1760_v32, %v785_v13  ;;  %v813_v29 = vpop.permute.xlu0 %812 }
 0x1a6   : > { %v839_v22 = vmul.f32 %v1760_v32, %v813_v29  ;;  %v955_v29 = vrot.slane %v1457_v21, 1 }
 0x1a7   : > { %v844_v2 = vadd.f32 %v832_v48, %v771_v33 }
 0x1a9   : > { %1164 = vtanh.f32 %v844_v2 }
 0x1aa   : > { %1166 = vtanh.f32 %v845_v6  ;;  %v707_v6 = vadd.f32 %v695_v57, %v1678_v14  ;;  %v770_v14 = vmul.f32 %v1720_v20, %v1756_v39 }
 0x1ab   : > { %1168 = vtanh.f32 %v846_v60 }
 0x1ac   : > { %v797_v28 = vpop.permute.xlu1 %796  ;;  %v878_v1 = vpop.permute.xlu2 %877  ;;  %v780_v34 = vadd.f32 %v768_v17, %v707_v6  ;;  %v782_v53 = vadd.f32 %v770_v14, %v1716_v50 }
 0x1ad   : > { %v835_v45 = vmul.f32 %v1760_v32, %v797_v28  ;;  %v778_v28 = vadd.f32 %v766_v63, %v1731_v54  ;;  %v825_v42 = vpop.permute.xlu0 %824  ;;  %v769_v54 = vmul.f32 %v1720_v20, %v1746_v56  ;;  %v947_v63 = vld [vmem:[%s198_s17] sm:$0x1] }
 0x1ae   : > { %v842_v51 = vmul.f32 %v1760_v32, %v825_v42  ;;  %v948_v38 = vmul.f32 -8.0, %v947_v63 }
 0x1af   : > { %v1165_v46 = vpop.eup %1164  ;;  %v847_v62 = vadd.f32 %v835_v45, %v774_v3  ;;  %v851_v48 = vadd.f32 %v839_v22, %v778_v28  ;;  %v781_v26 = vadd.f32 %v769_v54, %v1739_v8 }
 0x1b0   : > { %v1167_v40 = vpop.eup %1166  ;;  %v916_v35 = vmul.f32 %v1165_v46, %v870_v27 }
 0x1b1   : > { %v1169_v59 = vpop.eup %1168  ;;  %1170 = vtanh.f32 %v847_v62  ;;  %v854_v5 = vadd.f32 %v842_v51, %v781_v26 }
 0x1b2   : > { %v918_v47 = vmul.f32 %v1169_v59, %v878_v1  ;;  %1172 = vtanh.f32 %v848_v16 }
 0x1b4   : > { %v805_v7 = vpop.permute.xlu1 %804  ;;  %v886_v12 = vpop.permute.xlu2 %885 }
 0x1b5   : > { %v837_v9 = vmul.f32 %v1760_v32, %v805_v7  ;;  %v779_v7 = vadd.f32 %v767_v18, %v1709_v43  ;;  %v902_v58 = vpop.permute.xlu0 %901 }
 0x1b7   : > { %v849_v4 = vadd.f32 %v837_v9, %v776_v36  ;;  %v1171_v10 = vpop.eup %1170 }
 0x1b8   : > { %v1173_v15 = vpop.eup %1172 }
 0x1b9   : > { %1174 = vtanh.f32 %v849_v4  ;;  %v920_v49 = vmul.f32 %v1173_v15, %v886_v12  ;;  %v953_v15 = vld [vmem:[%s198_s17 + $0x1] sm:$0x1] }
 0x1ba   : > { %1176 = vtanh.f32 %v850_v23 }
 0x1bb   : > { %1178 = vtanh.f32 %v851_v48 }
 0x1bc   : > { %v817_v19 = vpop.permute.xlu1 %816 }
 0x1bd   : > { %v840_v13 = vmul.f32 %v1760_v32, %v817_v19  ;;  %v829_v27 = vpop.permute.xlu2 %828  ;;  %v853_v19 = vadd.f32 %v841_v30, %v780_v34 }
 0x1be   : > { %v843_v61 = vmul.f32 %v1760_v32, %v829_v27 }
 0x1bf   : > { %v1175_v24 = vpop.eup %1174  ;;  %v852_v33 = vadd.f32 %v840_v13, %v779_v7 }
 0x1c0   : > { %v1177_v1 = vpop.eup %1176 }
 0x1c1   : > { %1180 = vtanh.f32 %v852_v33  ;;  %v1179_v45 = vpop.eup %1178 }
 0x1c2   : > { %1182 = vtanh.f32 %v853_v19 }
 0x1c3   : > { %1184 = vtanh.f32 %v854_v5 }
 0x1c5   : > { %v874_v55 = vpop.permute.xlu1 %873 }
 0x1c6   : > { %v917_v52 = vmul.f32 %v1167_v40, %v874_v55  ;;  %v898_v60 = vpop.permute.xlu2 %897  ;;  %v855_v55 = vadd.f32 %v843_v61, %v782_v53 }
 0x1c7   : > { %v1181_v46 = vpop.eup %1180  ;;  %v923_v62 = vmul.f32 %v1179_v45, %v898_v60 }
 0x1c8   : > { %v928_v11 = vadd.f32 %v917_v52, %v916_v35  ;;  %v924_v8 = vmul.f32 %v1181_v46, %v902_v58  ;;  %v1183_v20 = vpop.eup %1182  ;;  %1186 = vtanh.f32 %v855_v55 }
 0x1c9   : > { %v1185_v9 = vpop.eup %1184 }
 0x1ca   : > { %v929_v0 = vadd.f32 %v928_v11, %v918_v47 }
 0x1cd   : > { %v882_v3 = vpop.permute.xlu1 %881 }
 0x1ce   : > { %v919_v44 = vmul.f32 %v1171_v10, %v882_v3  ;;  %v910_v39 = vpop.permute.xlu2 %909  ;;  %v1187_v11 = vpop.eup %1186 }
 0x1cf   : > { %v926_v12 = vmul.f32 %v1185_v9, %v910_v39 }
 0x1d0   : > { %v930_v25 = vadd.f32 %v929_v0, %v919_v44  ;;  %v957_v44 = vadd.f32 %v955_v29, %v1457_v21 }
 0x1d2   : > { %v931_v31 = vadd.f32 %v930_v25, %v920_v49  ;;  %v950_v49 = vrot.slane %v1457_v21, 5  ;;  %v954_v25 = vmul.f32 8.0, %v953_v15  ;;  %v959_v13 = vrot.slane %v957_v44, 3 }
 0x1d4   : > { %v961_v57 = vmul.f32 %v959_v13, %v954_v25 }
 0x1d5   : > { %v890_v41 = vpop.permute.xlu1 %889 }
 0x1d6   : > { %v921_v2 = vmul.f32 %v1175_v24, %v890_v41 }
 0x1d8   : > { %v932_v43 = vadd.f32 %v931_v31, %v921_v2  ;;  %v952_v31 = vmul.f32 %v950_v49, %v948_v38 }
 0x1da   : > { %v962_v48 = vsub.f32 %v952_v31, %v961_v57 }
 0x1dd   : > { %v894_v56 = vpop.permute.xlu1 %893 }
 0x1de   : > { %v922_v37 = vmul.f32 %v1177_v1, %v894_v56 }
 0x1e0   : > { %v933_v40 = vadd.f32 %v932_v43, %v922_v37 }
 0x1e2   : > { %v934_v16 = vadd.f32 %v933_v40, %v923_v62 }
 0x1e4   : > { %v935_v35 = vadd.f32 %v934_v16, %v924_v8 }
 0x1e5   : > { %v906_v52 = vpop.permute.xlu1 %905 }
 0x1e6   : > { %v925_v59 = vmul.f32 %v1183_v20, %v906_v52 }
 0x1e8   : > { %v936_v47 = vadd.f32 %v935_v35, %v925_v59 }
 0x1ea   : > { %v937_v32 = vadd.f32 %v936_v47, %v926_v12 }
 0x1ed   : > { %v914_v36 = vpop.permute.xlu1 %913 }
 0x1ee   : > { %v927_v0 = vmul.f32 %v1187_v11, %v914_v36 }
 0x1f0   : > { %v938_v4 = vadd.f32 %v937_v32, %v927_v0 }
 0x1f2   : > { %v939_v50 = vrot.slane %v938_v4, 4 }
 0x1f4   : > { %v940_v10 = vadd.f32 %v939_v50, %v938_v4 }
 0x1f6   : > { %v941_v3 = vrot.slane %v940_v10, 2 }
 0x1f8   : > { %v942_v18 = vadd.f32 %v941_v3, %v940_v10 }
 0x1fa   : > { %v943_v22 = vrot.slane %v942_v18, 1 }
 0x1fc   : > { %v944_v27 = vadd.f32 %v943_v22, %v942_v18 }
 0x1fe   : > { %v945_v28 = vmul.f32 0.33333334, %v944_v27 }
 0x200   : > { %v946_v7 = vadd.f32 0.004452524, %v945_v28 }
 0x202   : > { %v963_v23 = vmul.f32 %v946_v7, %v946_v7 }
 0x204   : > { %v964_v24 = vmul.f32 10.0, %v963_v23 }
 0x206   : > { %v965_v21 = vadd.f32 %v964_v24, %v962_v48 }
 0x208   : > { %966 = vst [vmem:[%s190_s26] sm:$0x1] %v965_v21 }
 0x209   : > { %1245 = shalt.err (!%p1242_p8)
}
 0x20a   : > { %1073 = dma.vmem_to_hbm [thread:$0]  (%p1357_p5), %s979_s27, 16, %s981_s28, %s968_s29  }
 0x20b PF: > { %p1085_p9 = scmp.ge.s32.totalorder %s1284_s15, 2  ;;  %s992_s9 = sand.u32 1, %s1272_s12  }
 0x20c   : > { %s993_s10 = scalar_lea.sflag [#allocation4], %s992_s9 }
 0x20d   : > { %p1080_p10 = pnand %p1085_p9, %p1361_p6 }
 0x20f   : > { %p1081_p11 = pneg %p1080_p10 }
 0x211   : > { %1267 = dma.done.wait (%p1081_p11), %s993_s10, 16  }
 0x212   : > { %1269 = vsyncadd (%p1081_p11), %s993_s10, 4294967280  ;;  %p14_p12 = scmp.ge.s32.totalorder %s1344_s18, 4   ;;  %s1843_s12 = smov %s1276_s13 }
 0x213   : > { %s1844_s13 = smov %s1280_s14  ;;  %s1845_s14 = smov %s1355_s21 }
 0x214   : > { %s1846_s15 = smov %s1344_s18  ;;  %16 = sbr.rel (!%p14_p12) target bundleno = 4 (0x4), region = 75 }
 0x219   :  { %998 = vsyncpa [#allocation3], 1 }
 0x21a   :  { %1000 = vsyncpa [#allocation3 + $0x1], 1 }
 0x21b   :  { %1001 = vsyncpa [#allocation4], 1 }
 0x21c   :  { %1003 = vsyncpa [#allocation4 + $0x1], 1 }

</bundles_post_ra>
